<compile_context>
chip_gen: v7x
topology: tpu7x:2x2x1
jax: 0.10.0
libtpu: 0.0.40
codegen_flags: <defaults>
</compile_context>

<pallas_src>
import functools

import jax
import jax.numpy as jnp
from jax.experimental import pallas as pl
from jax.experimental.pallas import tpu as pltpu


def _se_kernel(x_ref, w1_ref, w2_ref, o_ref, pooled_ref, gate_ref, *, inv_hw, tn):
    """One grid step = TN images.

    x_ref      : (TN, C, HWp) images; C on sublanes, padded H*W on lanes
    w1_ref     : (Ch, C)      fc1 weight (PyTorch nn.Linear layout (out, in))
    w2_ref     : (C, Ch)      fc2 weight
    o_ref      : (TN, C, HWp)
    pooled_ref : (C, TN) f32 VMEM scratch (per-image pooled column)
    gate_ref   : (C, TN) f32 VMEM scratch (per-image gate column)
    """
    # --- squeeze: global average pool, streamed one image at a time --------
    # (each (C, HWp) slab is loaded, reduced over the lane axis and dropped,
    #  so peak vreg pressure stays ~1 image regardless of TN)
    for j in range(tn):
        xj = x_ref[j].astype(jnp.float32)                           # (C, HWp)
        pooled_ref[:, j:j + 1] = (
            jnp.sum(xj, axis=1, keepdims=True) * inv_hw)            # (C, 1)

    # --- excitation: FC -> ReLU -> FC -> sigmoid, batched over TN images ---
    pooled = pooled_ref[...]                                        # (C, TN) f32
    w1 = w1_ref[...].astype(jnp.float32)                            # (Ch, C)
    w2 = w2_ref[...].astype(jnp.float32)                            # (C, Ch)
    h = jnp.maximum(
        jnp.dot(w1, pooled, preferred_element_type=jnp.float32), 0.0)  # (Ch, TN)
    gate_ref[...] = jax.nn.sigmoid(
        jnp.dot(w2, h, preferred_element_type=jnp.float32))         # (C, TN)

    # --- scale: lane-dense streaming epilogue (1 vld + 1 vmul + 1 vst) -----
    for j in range(tn):
        g = gate_ref[:, j:j + 1].astype(o_ref.dtype)                # (C, 1) tiny cast
        o_ref[j] = x_ref[j] * g                                     # re-read from VMEM


def se_layer(x_nchw, w1, w2, *, vmem_tile_budget_bytes=12 * 1024 * 1024, max_tn=64):
    """SELayer forward.  x_nchw: (N, C, H, W); w1: (C//r, C); w2: (C, C//r)."""
    N, C, H, W = x_nchw.shape
    HW = H * W
    Ch = w1.shape[0]

    # Lane-density guard: pad the spatial axis to a multiple of 128 so every
    # store is an unmasked, lane-dense vst (zeros don't change the mean since
    # we divide by the original HW).
    HW_p = ((HW + 127) // 128) * 128
    x = x_nchw.reshape(N, C, HW)
    if HW_p != HW:
        x = jnp.pad(x, ((0, 0), (0, 0), (0, HW_p - HW)))

    # Pick the largest TN that keeps the double-buffered in+out tiles inside a
    # conservative VMEM budget (safe on every generation's default scoped
    # limit, including v7x's 32 MiB).
    itemsize = x.dtype.itemsize
    tile_img_bytes = C * HW_p * itemsize
    tn = max(1, vmem_tile_budget_bytes // (4 * tile_img_bytes))  # 2 bufs x (in+out)
    tn = min(tn, N, max_tn)
    if N >= 4:
        # Leave at least two "parallel" grid steps so v7x's 2 TensorCores
        # both get work (no-op on single-TC v5e/v6e).
        tn = min(tn, -(-N // 2))
    grid = (pl.cdiv(N, tn),)

    kernel = functools.partial(_se_kernel, inv_hw=1.0 / float(HW), tn=tn)
    out = pl.pallas_call(
        kernel,
        out_shape=jax.ShapeDtypeStruct((N, C, HW_p), x.dtype),
        grid=grid,
        in_specs=[
            pl.BlockSpec((tn, C, HW_p), lambda n: (n, 0, 0)),
            pl.BlockSpec((Ch, C), lambda n: (0, 0)),   # constant -> DMA'd once
            pl.BlockSpec((C, Ch), lambda n: (0, 0)),
        ],
        out_specs=pl.BlockSpec((tn, C, HW_p), lambda n: (n, 0, 0)),
        scratch_shapes=[
            pltpu.VMEM((C, tn), jnp.float32),   # pooled
            pltpu.VMEM((C, tn), jnp.float32),   # gates
        ],
        compiler_params=pltpu.CompilerParams(
            dimension_semantics=("parallel",)),
    )(x, w1, w2)

    if HW_p != HW:
        out = out[:, :, :HW]
    return out.reshape(N, C, H, W)


def se_layer_ref(x_nchw, w1, w2):
    """Pure-JAX reference matching the PyTorch SELayer forward."""
    pooled = jnp.mean(x_nchw.astype(jnp.float32), axis=(2, 3))      # (N, C)
    h = jnp.maximum(pooled @ w1.T, 0.0)                             # (N, C//r)
    y = jax.nn.sigmoid(h @ w2.T)                                    # (N, C)
    return x_nchw.astype(jnp.float32) * y[:, :, None, None]


def init_params(key, channel, reduction=16):
    hidden = channel // reduction
    k1, k2 = jax.random.split(key)
    # nn.Linear(channel, hidden, bias=False) -> weight (hidden, channel)
    w1 = (1.0 / jnp.sqrt(channel)) * jax.random.normal(
        k1, (hidden, channel), dtype=jnp.float32)
    # nn.Linear(hidden, channel, bias=False) -> weight (channel, hidden)
    w2 = (1.0 / jnp.sqrt(hidden)) * jax.random.normal(
        k2, (channel, hidden), dtype=jnp.float32)
    return w1, w2


if __name__ == "__main__":
    key = jax.random.PRNGKey(0)
    k_x, k_p = jax.random.split(key)

    # channel must be >= reduction (default 16), so C=64 (hidden=4), batch=2.
    N, C, H, W = 2, 64, 16, 16
    x = jax.random.normal(k_x, (N, C, H, W), dtype=jnp.float32)
    w1, w2 = init_params(k_p, C, reduction=16)

    # f32 I/O path (strict check).
    out = se_layer(x, w1, w2)
    jax.block_until_ready(out)
    assert out.shape == (N, C, H, W)
    ref = se_layer_ref(x, w1, w2)
    assert jnp.allclose(out, ref, atol=1e-3, rtol=1e-3), "f32 mismatch vs reference"

    # bf16 I/O path (halves HBM traffic; FC/sigmoid stay in f32 in-kernel).
    x_bf = x.astype(jnp.bfloat16)
    out_bf = se_layer(x_bf, w1, w2)
    jax.block_until_ready(out_bf)
    assert out_bf.dtype == jnp.bfloat16
    ref_bf = se_layer_ref(x_bf.astype(jnp.float32), w1, w2)
    assert jnp.allclose(out_bf.astype(jnp.float32), ref_bf, atol=5e-2, rtol=5e-2), \
        "bf16 mismatch vs reference"

    # Non-multiple-of-128 spatial size exercises the lane-dense padding path.
    x7 = jax.random.normal(k_x, (N, C, 7, 7), dtype=jnp.float32)
    out7 = se_layer(x7, w1, w2)
    jax.block_until_ready(out7)
    ref7 = se_layer_ref(x7, w1, w2)
    assert jnp.allclose(out7, ref7, atol=1e-3, rtol=1e-3), "padded-HW mismatch vs reference"

    print("KERNEL_OK")
</pallas_src>

<mosaic_0001>
module attributes {stable_mosaic.version = 11 : i64} {
  func.func @_se_kernel(%arg0: i32, %arg1: memref<2x64x256xf32, #tpu.memory_space<vmem>>, %arg2: memref<4x64xf32, #tpu.memory_space<vmem>>, %arg3: memref<64x4xf32, #tpu.memory_space<vmem>>, %arg4: memref<2x64x256xf32, #tpu.memory_space<vmem>>, %arg5: memref<64x2xf32, #tpu.memory_space<vmem>>, %arg6: memref<64x2xf32, #tpu.memory_space<vmem>>) attributes {dimension_semantics = [#tpu.dimension_semantics<parallel>], iteration_bounds = array<i64: 1>, scalar_prefetch = 0 : i64, scratch_operands = 2 : i64, tpu.core_type = #tpu.core_type<tc>, window_params = [{transform_indices = @transform_0, window_bounds = array<i64: 2, 64, 256>}, {pipeline_mode = #tpu.pipeline_mode<synchronous>, transform_indices = @transform_1, window_bounds = array<i64: 4, 64>}, {pipeline_mode = #tpu.pipeline_mode<synchronous>, transform_indices = @transform_2, window_bounds = array<i64: 64, 4>}, {transform_indices = @transform_3, window_bounds = array<i64: 2, 64, 256>}]} {
    %c0 = arith.constant 0 : index
    %c0_0 = arith.constant 0 : index
    %c0_1 = arith.constant 0 : index
    %0 = vector.load %arg1[%c0, %c0_0, %c0_1] : memref<2x64x256xf32, #tpu.memory_space<vmem>>, vector<1x64x256xf32>
    %1 = vector.shape_cast %0 : vector<1x64x256xf32> to vector<64x256xf32>
    %cst = arith.constant dense<0.000000e+00> : vector<64xf32>
    %2 = vector.multi_reduction <add>, %1, %cst [1] : vector<64x256xf32> to vector<64xf32>
    %3 = vector.shape_cast %2 : vector<64xf32> to vector<64x1xf32>
    %cst_2 = arith.constant 3.906250e-03 : f32
    %4 = vector.broadcast %cst_2 : f32 to vector<64x1xf32>
    %5 = arith.mulf %3, %4 : vector<64x1xf32>
    %c0_3 = arith.constant 0 : index
    %c0_4 = arith.constant 0 : index
    %6 = vector.load %arg5[%c0_3, %c0_4] : memref<64x2xf32, #tpu.memory_space<vmem>>, vector<64x1xf32>
    tpu.vector_store %arg5[%c0_3, %c0_4], %5 {strides = array<i32>} : memref<64x2xf32, #tpu.memory_space<vmem>>, vector<64x1xf32>,
    %c1 = arith.constant 1 : index
    %c0_5 = arith.constant 0 : index
    %c0_6 = arith.constant 0 : index
    %7 = vector.load %arg1[%c1, %c0_5, %c0_6] : memref<2x64x256xf32, #tpu.memory_space<vmem>>, vector<1x64x256xf32>
    %8 = vector.shape_cast %7 : vector<1x64x256xf32> to vector<64x256xf32>
    %cst_7 = arith.constant dense<0.000000e+00> : vector<64xf32>
    %9 = vector.multi_reduction <add>, %8, %cst_7 [1] : vector<64x256xf32> to vector<64xf32>
    %10 = vector.shape_cast %9 : vector<64xf32> to vector<64x1xf32>
    %cst_8 = arith.constant 3.906250e-03 : f32
    %11 = vector.broadcast %cst_8 : f32 to vector<64x1xf32>
    %12 = arith.mulf %10, %11 : vector<64x1xf32>
    %c0_9 = arith.constant 0 : index
    %c1_10 = arith.constant 1 : index
    %13 = vector.load %arg5[%c0_9, %c1_10] : memref<64x2xf32, #tpu.memory_space<vmem>>, vector<64x1xf32>
    tpu.vector_store %arg5[%c0_9, %c1_10], %12 {strides = array<i32>} : memref<64x2xf32, #tpu.memory_space<vmem>>, vector<64x1xf32>,
    %c0_11 = arith.constant 0 : index
    %c0_12 = arith.constant 0 : index
    %14 = vector.load %arg5[%c0_11, %c0_12] : memref<64x2xf32, #tpu.memory_space<vmem>>, vector<64x2xf32>
    %c0_13 = arith.constant 0 : index
    %c0_14 = arith.constant 0 : index
    %15 = vector.load %arg2[%c0_13, %c0_14] : memref<4x64xf32, #tpu.memory_space<vmem>>, vector<4x64xf32>
    %c0_15 = arith.constant 0 : index
    %c0_16 = arith.constant 0 : index
    %16 = vector.load %arg3[%c0_15, %c0_16] : memref<64x4xf32, #tpu.memory_space<vmem>>, vector<64x4xf32>
    %cst_17 = arith.constant dense<0.000000e+00> : vector<4x2xf32>
    %17 = tpu.matmul %15, %14, %cst_17 {dimension_numbers = #tpu.dot_dimension_numbers<[1], [0], [0], [1], [0, 0, 1, 1], [], []>} : vector<4x64xf32>, vector<64x2xf32>, vector<4x2xf32> -> vector<4x2xf32>
    %cst_18 = arith.constant 0.000000e+00 : f32
    %18 = vector.broadcast %cst_18 : f32 to vector<4x2xf32>
    %19 = arith.maximumf %17, %18 : vector<4x2xf32>
    %cst_19 = arith.constant dense<0.000000e+00> : vector<64x2xf32>
    %20 = tpu.matmul %16, %19, %cst_19 {dimension_numbers = #tpu.dot_dimension_numbers<[1], [0], [0], [1], [0, 0, 1, 1], [], []>} : vector<64x4xf32>, vector<4x2xf32>, vector<64x2xf32> -> vector<64x2xf32>
    %21 = arith.negf %20 : vector<64x2xf32>
    %22 = math.exp %21 : vector<64x2xf32>
    %cst_20 = arith.constant 1.000000e+00 : f32
    %23 = vector.broadcast %cst_20 : f32 to vector<64x2xf32>
    %24 = arith.addf %23, %22 : vector<64x2xf32>
    %25 = arith.divf %23, %24 : vector<64x2xf32>
    %c0_21 = arith.constant 0 : index
    %c0_22 = arith.constant 0 : index
    %26 = vector.load %arg6[%c0_21, %c0_22] : memref<64x2xf32, #tpu.memory_space<vmem>>, vector<64x2xf32>
    tpu.vector_store %arg6[%c0_21, %c0_22], %25 {strides = array<i32>} : memref<64x2xf32, #tpu.memory_space<vmem>>, vector<64x2xf32>,
    %c0_23 = arith.constant 0 : index
    %c0_24 = arith.constant 0 : index
    %27 = vector.load %arg6[%c0_23, %c0_24] : memref<64x2xf32, #tpu.memory_space<vmem>>, vector<64x1xf32>
    %c0_25 = arith.constant 0 : index
    %c0_26 = arith.constant 0 : index
    %c0_27 = arith.constant 0 : index
    %28 = vector.load %arg1[%c0_25, %c0_26, %c0_27] : memref<2x64x256xf32, #tpu.memory_space<vmem>>, vector<1x64x256xf32>
    %29 = vector.shape_cast %28 : vector<1x64x256xf32> to vector<64x256xf32>
    %30 = vector.broadcast %27 : vector<64x1xf32> to vector<64x256xf32>
    %31 = arith.mulf %29, %30 : vector<64x256xf32>
    %c0_28 = arith.constant 0 : index
    %c0_29 = arith.constant 0 : index
    %c0_30 = arith.constant 0 : index
    %32 = vector.load %arg4[%c0_28, %c0_29, %c0_30] : memref<2x64x256xf32, #tpu.memory_space<vmem>>, vector<1x64x256xf32>
    %33 = vector.shape_cast %32 : vector<1x64x256xf32> to vector<64x256xf32>
    %34 = vector.shape_cast %31 : vector<64x256xf32> to vector<1x64x256xf32>
    tpu.vector_store %arg4[%c0_28, %c0_29, %c0_30], %34 {strides = array<i32>} : memref<2x64x256xf32, #tpu.memory_space<vmem>>, vector<1x64x256xf32>,
    %c0_31 = arith.constant 0 : index
    %c1_32 = arith.constant 1 : index
    %35 = vector.load %arg6[%c0_31, %c1_32] : memref<64x2xf32, #tpu.memory_space<vmem>>, vector<64x1xf32>
    %c1_33 = arith.constant 1 : index
    %c0_34 = arith.constant 0 : index
    %c0_35 = arith.constant 0 : index
    %36 = vector.load %arg1[%c1_33, %c0_34, %c0_35] : memref<2x64x256xf32, #tpu.memory_space<vmem>>, vector<1x64x256xf32>
    %37 = vector.shape_cast %36 : vector<1x64x256xf32> to vector<64x256xf32>
    %38 = vector.broadcast %35 : vector<64x1xf32> to vector<64x256xf32>
    %39 = arith.mulf %37, %38 : vector<64x256xf32>
    %c1_36 = arith.constant 1 : index
    %c0_37 = arith.constant 0 : index
    %c0_38 = arith.constant 0 : index
    %40 = vector.load %arg4[%c1_36, %c0_37, %c0_38] : memref<2x64x256xf32, #tpu.memory_space<vmem>>, vector<1x64x256xf32>
    %41 = vector.shape_cast %40 : vector<1x64x256xf32> to vector<64x256xf32>
    %42 = vector.shape_cast %39 : vector<64x256xf32> to vector<1x64x256xf32>
    tpu.vector_store %arg4[%c1_36, %c0_37, %c0_38], %42 {strides = array<i32>} : memref<2x64x256xf32, #tpu.memory_space<vmem>>, vector<1x64x256xf32>,
    return
  }
  func.func @transform_0(%arg0: i32) -> (i32, i32, i32) {
    %c0_i32 = arith.constant 0 : i32
    %c0_i32_0 = arith.constant 0 : i32
    %c0_i32_1 = arith.constant 0 : i32
    return %arg0, %c0_i32, %c0_i32_0 : i32, i32, i32
  }
  func.func @transform_1(%arg0: i32) -> (i32, i32) {
    %c0_i32 = arith.constant 0 : i32
    %c0_i32_0 = arith.constant 0 : i32
    %c0_i32_1 = arith.constant 0 : i32
    return %c0_i32, %c0_i32_0 : i32, i32
  }
  func.func @transform_2(%arg0: i32) -> (i32, i32) {
    %c0_i32 = arith.constant 0 : i32
    %c0_i32_0 = arith.constant 0 : i32
    %c0_i32_1 = arith.constant 0 : i32
    return %c0_i32, %c0_i32_0 : i32, i32
  }
  func.func @transform_3(%arg0: i32) -> (i32, i32, i32) {
    %c0_i32 = arith.constant 0 : i32
    %c0_i32_0 = arith.constant 0 : i32
    %c0_i32_1 = arith.constant 0 : i32
    return %arg0, %c0_i32, %c0_i32_0 : i32, i32, i32
  }
}

</mosaic_0001>

<bundles_post_ra>
// kernel: tpu_custom_call.1
= control target key start
LH: loop header
LB: loop body
LE: loop exit
PB: predicated region body
PF: predicated region fallthrough
CT: control target
= control target key end

     0   :  { %8 = vsyncpa [#allocation5], 0  ;;  %s1083_s0 = inlined_call_operand.hbm [shape: f32[2,64,256], index: 0, kind: input, shape index: {}]   ;;  %s1084_s1 = inlined_call_operand.vmem [shape: f32[4,64], index: 1, kind: input, shape index: {}]   ;;  %s1085_s2 = inlined_call_operand.vmem [shape: f32[64,4], index: 2, kind: input, shape index: {}]   ;;  %s1086_s3 = inlined_call_operand.hbm [shape: f32[2,64,256], index: 3, kind: output, shape index: {}]  }
   0x1   :  { %9 = vsyncpa [#allocation6], 0  ;;  %s820_s12 = smov [#allocation4]   ;;  %s772_s16 = scalar_lea.hbm %s1083_s0, 4096 }
   0x2   :  { %s15_s13 = sshll.u32 %s820_s12, 4  ;;  %p773_p0 = scmp.ne.s32.totalorder %s1083_s0, %s772_s16  ;;  %s16_s13 = int_to_ptr.vmem [resolvable:$true] %s15_s13 }
   0x3   :  { %p776_p1 = scmp.lt.u32.totalorder %s772_s16, %s1083_s0 }
   0x5   :  { %p778_p2 = pnand %p776_p1, %p773_p0 }
   0x7   :  { %781 = shalt.err (!%p778_p2)
}
   0x8   :  { %s782_s21 = scalar_lea.vmem %s16_s13, 4096  ;;  %p787_p4 = scmp.lt.s32.totalorder %s16_s13, %s16_s13 }
   0x9   :  { %p783_p3 = scmp.ne.s32.totalorder %s16_s13, %s782_s21  ;;  %p788_p5 = scmp.lt.s32.totalorder %s782_s21, %s782_s21 }
   0xb   :  { %p789_p6 = por %p788_p5, %p787_p4 }
   0xd   :  { %p790_p7 = pnand %p789_p6, %p783_p3 }
   0xf   :  { %793 = shalt.err (!%p790_p7)
}
  0x10   :  { %s821_s22 = smov 256   ;;  %s822_s23 = smov 16  }
  0x11   :  { %21 = dma.hbm_to_vmem [thread:$0]  %s1083_s0, 4096, %s16_s13, [#allocation5], %s821_s22, %s821_s22, %s822_s23  }
  0x12   :  { %816 = dma.done.wait [#allocation5], 4096  }
  0x13   :  { %817 = vsyncadd [#allocation5], 4294963200  ;;  %v864_v0 = vld [vmem:[#allocation4 + $0x80] sm:$0xff]  ;;  %v866_v1 = vld [vmem:[#allocation4 + $0x88] sm:$0xff]  ;;  %v823_v48 = vmov 0.0|0.0   ;;  %vm824_vm0 = vmmov 0  }
  0x14   :  { %v868_v2 = vld [vmem:[#allocation4] sm:$0xff]  ;;  %v103_v3 = vadd.f32 %v866_v1, %v864_v0  ;;  %v872_v4 = vld [vmem:[#allocation4 + $0x8] sm:$0xff]  ;;  %v874_v5 = vld [vmem:[#allocation4 + $0x90] sm:$0xff]  ;;  %706 = vmatprep.subr.bf16.mxu0 %v823_v48  ;;  %v825_v49 = vmov 0.0   ;;  %vm77_vm1 = vcmask 7168   ;;  %vm135_vm2 = vcmask 15368  }
  0x15   :  { %v876_v6 = vld [vmem:[#allocation4 + $0x98] sm:$0xff]  ;;  %v45_v7 = vadd.f32 %v872_v4, %v868_v2  ;;  %v880_v8 = vld [vmem:[#allocation4 + $0x10] sm:$0xff]  ;;  %v892_v14 = vld [vmem:[#allocation4 + $0x20] sm:$0xff]  ;;  %689 = vmatprep.mubr.msk.f32.mxu0 %vm824_vm0, %v825_v49  ;;  %vm161_vm3 = vcmask 523264   ;;  %vm236_vm4 = vcmask 31744   ;;  %vm261_vm5 = vcmask 1043456  }
  0x16   :  { %v882_v9 = vld [vmem:[#allocation4 + $0x18] sm:$0xff]  ;;  %104 = vadd.xlane.f32.xlu1 %v103_v3  ;;  %v106_v10 = vadd.f32 %v876_v6, %v874_v5  ;;  %v888_v12 = vld [vmem:[#allocation4 + $0x30] sm:$0xff]  ;;  %v894_v15 = vld [vmem:[#allocation4 + $0x28] sm:$0xff]  ;;  %vm418_vm6 = vcmask 15360  }
  0x17   :  { %46 = vadd.xlane.f32.xlu0 %v45_v7  ;;  %v48_v11 = vadd.f32 %v882_v9, %v880_v8  ;;  %v890_v13 = vld [vmem:[#allocation4 + $0x38] sm:$0xff]  ;;  %v51_v17 = vadd.f32 %v894_v15, %v892_v14  ;;  %v900_v18 = vld [vmem:[#allocation4 + $0xb0] sm:$0xff]  ;;  %v904_v20 = vld [vmem:[#allocation4 + $0xa0] sm:$0xff] }
  0x18   :  { %v54_v16 = vadd.f32 %v890_v13, %v888_v12  ;;  %v902_v19 = vld [vmem:[#allocation4 + $0xb8] sm:$0xff]  ;;  %v906_v21 = vld [vmem:[#allocation4 + $0xa8] sm:$0xff]  ;;  %v912_v24 = vld [vmem:[#allocation4 + $0x50] sm:$0xff] }
  0x19   :  { %v112_v22 = vadd.f32 %v902_v19, %v900_v18  ;;  %v109_v23 = vadd.f32 %v906_v21, %v904_v20  ;;  %v914_v25 = vld [vmem:[#allocation4 + $0x58] sm:$0xff]  ;;  %v916_v26 = vld [vmem:[#allocation4 + $0x40] sm:$0xff]  ;;  %v918_v27 = vld [vmem:[#allocation4 + $0x48] sm:$0xff] }
  0x1a   :  { %107 = vadd.xlane.f32.xlu1 %v106_v10  ;;  %v60_v28 = vadd.f32 %v914_v25, %v912_v24  ;;  %v57_v29 = vadd.f32 %v918_v27, %v916_v26  ;;  %v924_v30 = vld [vmem:[#allocation4 + $0xd0] sm:$0xff]  ;;  %v926_v31 = vld [vmem:[#allocation4 + $0xd8] sm:$0xff]  ;;  %v928_v32 = vld [vmem:[#allocation4 + $0xc0] sm:$0xff] }
  0x1b   :  { %49 = vadd.xlane.f32.xlu0 %v48_v11  ;;  %v930_v33 = vld [vmem:[#allocation4 + $0xc8] sm:$0xff]  ;;  %v118_v34 = vadd.f32 %v926_v31, %v924_v30  ;;  %v936_v36 = vld [vmem:[#allocation4 + $0x70] sm:$0xff]  ;;  %v938_v37 = vld [vmem:[#allocation4 + $0x78] sm:$0xff] }
  0x1c   :  { %v115_v35 = vadd.f32 %v930_v33, %v928_v32  ;;  %v940_v38 = vld [vmem:[#allocation4 + $0x60] sm:$0xff]  ;;  %v942_v39 = vld [vmem:[#allocation4 + $0x68] sm:$0xff]  ;;  %v66_v40 = vadd.f32 %v938_v37, %v936_v36  ;;  %v948_v42 = vld [vmem:[#allocation4 + $0xf0] sm:$0xff] }
  0x1d   :  { %v63_v41 = vadd.f32 %v942_v39, %v940_v38  ;;  %v950_v43 = vld [vmem:[#allocation4 + $0xf8] sm:$0xff]  ;;  %v952_v44 = vld [vmem:[#allocation4 + $0xe0] sm:$0xff]  ;;  %v954_v45 = vld [vmem:[#allocation4 + $0xe8] sm:$0xff] }
  0x1e   :  { %55 = vadd.xlane.f32.xlu1 %v54_v16  ;;  %v124_v46 = vadd.f32 %v950_v43, %v948_v42  ;;  %v121_v47 = vadd.f32 %v954_v45, %v952_v44 }
  0x1f   :  { %52 = vadd.xlane.f32.xlu0 %v51_v17 }
  0x22   :  { %113 = vadd.xlane.f32.xlu1 %v112_v22 }
  0x23   :  { %110 = vadd.xlane.f32.xlu0 %v109_v23 }
  0x26   :  { %61 = vadd.xlane.f32.xlu1 %v60_v28 }
  0x27   :  { %58 = vadd.xlane.f32.xlu0 %v57_v29 }
  0x2a   :  { %119 = vadd.xlane.f32.xlu1 %v118_v34 }
  0x2b   :  { %116 = vadd.xlane.f32.xlu0 %v115_v35 }
  0x2e   :  { %67 = vadd.xlane.f32.xlu1 %v66_v40 }
  0x2f   :  { %64 = vadd.xlane.f32.xlu0 %v63_v41 }
  0x32   :  { %125 = vadd.xlane.f32.xlu1 %v124_v46 }
  0x33   :  { %122 = vadd.xlane.f32.xlu0 %v121_v47 }
  0xa3   :  { %v105_v50 = vpop.xlane.xlu1 %104 }
  0xa4   :  { %v127_v51 = vmul.f32 0.00390625, %v105_v50  ;;  %v47_v52 = vpop.xlane.xlu0 %46 }
  0xa5   :  { %v69_v53 = vmul.f32 0.00390625, %v47_v52 }
  0xa7   :  { %78 = vst.msk [vmem:[#allocation2] sm:$0xff] %vm77_vm1, %v69_v53  ;;  %v108_v54 = vpop.xlane.xlu1 %107 }
  0xa8   :  { %136 = vst.msk [vmem:[#allocation2] sm:$0xff] %vm135_vm2, %v127_v51  ;;  %v128_v55 = vmul.f32 0.00390625, %v108_v54  ;;  %v50_v56 = vpop.xlane.xlu0 %49 }
  0xa9   :  { %v70_v57 = vmul.f32 0.00390625, %v50_v56 }
  0xab   :  { %79 = vst.msk [vmem:[#allocation2 + $0x8] sm:$0xff] %vm77_vm1, %v70_v57  ;;  %v56_v58 = vpop.xlane.xlu1 %55 }
  0xac   :  { %137 = vst.msk [vmem:[#allocation2 + $0x8] sm:$0xff] %vm135_vm2, %v128_v55  ;;  %v72_v59 = vmul.f32 0.00390625, %v56_v58  ;;  %v53_v60 = vpop.xlane.xlu0 %52 }
  0xad   :  { %v71_v61 = vmul.f32 0.00390625, %v53_v60 }
  0xae   :  { %81 = vst.msk [vmem:[#allocation2 + $0x18] sm:$0xff] %vm77_vm1, %v72_v59 }
  0xaf   :  { %80 = vst.msk [vmem:[#allocation2 + $0x10] sm:$0xff] %vm77_vm1, %v71_v61  ;;  %v114_v62 = vpop.xlane.xlu1 %113  ;;  %v144_v11 = vld [vmem:[#allocation2] sm:$0xff] }
  0xb0   :  { %v130_v63 = vmul.f32 0.00390625, %v114_v62  ;;  %v111_v3 = vpop.xlane.xlu0 %110 }
  0xb1   :  { %v129_v7 = vmul.f32 0.00390625, %v111_v3  ;;  %v153_v3 = vld [vmem:[%s1085_s2] sm:$0xff] }
  0xb2   :  { %139 = vst.msk [vmem:[#allocation2 + $0x18] sm:$0xff] %vm135_vm2, %v130_v63  ;;  %v152_v63 = vld [vmem:[%s1084_s1] sm:$0xf]  ;;  %694 = vmatprep.mubr.msk.f32.mxu1 %vm236_vm4, %v153_v3 }
  0xb3   :  { %138 = vst.msk [vmem:[#allocation2 + $0x10] sm:$0xff] %vm135_vm2, %v129_v7  ;;  %v62_v10 = vpop.xlane.xlu1 %61  ;;  %v145_v16 = vld [vmem:[#allocation2 + $0x8] sm:$0xff] }
  0xb4   :  { %v74_v17 = vmul.f32 0.00390625, %v62_v10  ;;  %v59_v22 = vpop.xlane.xlu0 %58  ;;  %v707_v23 = vpack.c.bf16 %v145_v16, %v144_v11  ;;  %v154_v11 = vld [vmem:[%s1085_s2 + $0x8] sm:$0xff]  ;;  %v155_v16 = vld [vmem:[%s1085_s2 + $0x10] sm:$0xff] }
  0xb5   :  { %v73_v28 = vmul.f32 0.00390625, %v59_v22  ;;  %v157_v22 = vld [vmem:[%s1085_s2 + $0x20] sm:$0xff] }
  0xb6   :  { %83 = vst.msk [vmem:[#allocation2 + $0x28] sm:$0xff] %vm77_vm1, %v74_v17  ;;  %708 = vmatpush3.bf16.msra.mxu0 %v707_v23  ;;  %v156_v17 = vld [vmem:[%s1085_s2 + $0x18] sm:$0xff]  ;;  %v158_v23 = vld [vmem:[%s1085_s2 + $0x28] sm:$0xff] }
  0xb7   :  { %82 = vst.msk [vmem:[#allocation2 + $0x20] sm:$0xff] %vm77_vm1, %v73_v28  ;;  %v120_v29 = vpop.xlane.xlu1 %119  ;;  %709 = vmatprep.subr.bf16.mxu0 %v823_v48  ;;  %v159_v28 = vld [vmem:[%s1085_s2 + $0x30] sm:$0xff] }
  0xb8   :  { %v132_v34 = vmul.f32 0.00390625, %v120_v29  ;;  %v117_v35 = vpop.xlane.xlu0 %116  ;;  %v160_v29 = vld [vmem:[%s1085_s2 + $0x38] sm:$0xff]  ;;  %s828_s2 = smov [#allocation7]  }
  0xb9   :  { %v131_v40 = vmul.f32 0.00390625, %v117_v35  ;;  %v147_v41 = vld [vmem:[#allocation2 + $0x18] sm:$0xff]  ;;  %v827_v35 = vmov 0   ;;  %s625_s15 = sshll.u32 %s828_s2, 4  ;;  %s626_s15 = int_to_ptr.vmem [resolvable:$true] %s625_s15 }
  0xba   :  { %141 = vst.msk [vmem:[#allocation2 + $0x28] sm:$0xff] %vm135_vm2, %v132_v34  ;;  %v146_v46 = vld [vmem:[#allocation2 + $0x10] sm:$0xff]  ;;  %v826_v34 = vmov 1   ;;  %727 = vset.pattern.permute.xlu1 %v827_v35  ;;  %s794_s16 = scalar_lea.vmem %s626_s15, 4096  ;;  %p799_p9 = scmp.lt.s32.totalorder %s626_s15, %s626_s15 }
  0xbb   :  { %140 = vst.msk [vmem:[#allocation2 + $0x20] sm:$0xff] %vm135_vm2, %v131_v40  ;;  %v68_v47 = vpop.xlane.xlu1 %67  ;;  %v710_v49 = vpack.c.bf16 %v147_v41, %v146_v46  ;;  %728 = vset.pattern.permute.xlu0 %v826_v34  ;;  %p795_p8 = scmp.ne.s32.totalorder %s626_s15, %s794_s16  ;;  %p800_p10 = scmp.lt.s32.totalorder %s794_s16, %s794_s16 }
  0xbc   :  { %v76_v50 = vmul.f32 0.00390625, %v68_v47  ;;  %v65_v51 = vpop.xlane.xlu0 %64 }
  0xbd   :  { %v75_v52 = vmul.f32 0.00390625, %v65_v51  ;;  %711 = vmatpush3.bf16.msra.mxu0 %v710_v49  ;;  %p801_p11 = por %p800_p10, %p799_p9 }
  0xbe   :  { %85 = vst.msk [vmem:[#allocation2 + $0x38] sm:$0xff] %vm77_vm1, %v76_v50  ;;  %712 = vmatprep.subr.bf16.mxu0 %v823_v48 }
  0xbf   :  { %84 = vst.msk [vmem:[#allocation2 + $0x30] sm:$0xff] %vm77_vm1, %v75_v52  ;;  %v126_v53 = vpop.xlane.xlu1 %125  ;;  %p802_p12 = pnand %p801_p11, %p795_p8 }
  0xc0   :  { %v134_v54 = vmul.f32 0.00390625, %v126_v53  ;;  %v123_v55 = vpop.xlane.xlu0 %122 }
  0xc1   :  { %v133_v56 = vmul.f32 0.00390625, %v123_v55  ;;  %v149_v57 = vld [vmem:[#allocation2 + $0x28] sm:$0xff] }
  0xc2   :  { %143 = vst.msk [vmem:[#allocation2 + $0x38] sm:$0xff] %vm135_vm2, %v134_v54  ;;  %v148_v58 = vld [vmem:[#allocation2 + $0x20] sm:$0xff] }
  0xc3   :  { %142 = vst.msk [vmem:[#allocation2 + $0x30] sm:$0xff] %vm135_vm2, %v133_v56  ;;  %v713_v59 = vpack.c.bf16 %v149_v57, %v148_v58 }
  0xc5   :  { %714 = vmatpush3.bf16.msra.mxu0 %v713_v59 }
  0xc6   :  { %715 = vmatprep.subr.bf16.mxu0 %v823_v48 }
  0xc9   :  { %v151_v60 = vld [vmem:[#allocation2 + $0x38] sm:$0xff] }
  0xca   :  { %v150_v61 = vld [vmem:[#allocation2 + $0x30] sm:$0xff] }
  0xcb   :  { %v716_v62 = vpack.c.bf16 %v151_v60, %v150_v61 }
  0xcd   :  { %717 = vmatpush3.bf16.msra.mxu0 %v716_v62 }
  0xd0   :  { %690 = vmatmul.mubr.msk.f32.vlgmr.msra.gmra.mrb[0].mxu0 %vm161_vm3, %v152_v63 }
 0x1a3   :  { %v231_v7 = vpop.f32.mrb[0].mxu0 }
 0x1a4   :  { %v235_v48 = vmax.f32 %v231_v7, 0.0  ;;  %v691_v10 = vpop.f32.mrb[1].mxu0 }
 0x1a6   :  { %692 = vmatprep.subr.msk.mxu1 %vm261_vm5, %v235_v48 }
 0x1a7   :  { %693 = vmatpush3.msk.msra.mxu1 %vm261_vm5, %v235_v48 }
 0x1a8   :  { %695 = vmatmul.mubr.msk.f32.vlgmr.msra.gmra.mrb[0].mxu1 %vm236_vm4, %v154_v11 }
 0x1a9   :  { %697 = vmatprep.mubr.msk.f32.mxu1 %vm236_vm4, %v155_v16 }
 0x1ac   :  { %698 = vmatmul.mubr.msk.f32.gmra.mrb[2].mxu1 %vm236_vm4, %v156_v17 }
 0x1ad   :  { %700 = vmatprep.mubr.msk.f32.mxu1 %vm236_vm4, %v157_v22 }
 0x1b0   :  { %701 = vmatmul.mubr.msk.f32.gmra.mrb[4].mxu1 %vm236_vm4, %v158_v23 }
 0x1b1   :  { %703 = vmatprep.mubr.msk.f32.mxu1 %vm236_vm4, %v159_v28 }
 0x1b4   :  { %704 = vmatmul.mubr.msk.f32.gmra.mrb[6].mxu1 %vm236_vm4, %v160_v29 }
 0x27b   :  { %v696_v40 = vpop.f32.mrb[0].mxu1 }
 0x27c   :  { %v648_v41 = vmul.f32 -1.442695, %v696_v40  ;;  %v331_v46 = vpop.f32.mrb[1].mxu1 }
 0x27d   :  { %v647_v47 = vmul.f32 -1.442695, %v331_v46 }
 0x27e   :  { %740 = vpow2.f32 %v648_v41 }
 0x27f   :  { %742 = vpow2.f32 %v647_v47  ;;  %v699_v49 = vpop.f32.mrb[2].mxu1 }
 0x280   :  { %v650_v50 = vmul.f32 -1.442695, %v699_v49  ;;  %v341_v51 = vpop.f32.mrb[3].mxu1 }
 0x281   :  { %v649_v52 = vmul.f32 -1.442695, %v341_v51 }
 0x282   :  { %744 = vpow2.f32 %v650_v50 }
 0x283   :  { %746 = vpow2.f32 %v649_v52  ;;  %v702_v53 = vpop.f32.mrb[4].mxu1 }
 0x284   :  { %v652_v54 = vmul.f32 -1.442695, %v702_v53  ;;  %v351_v55 = vpop.f32.mrb[5].mxu1 }
 0x285   :  { %v651_v56 = vmul.f32 -1.442695, %v351_v55 }
 0x286   :  { %748 = vpow2.f32 %v652_v54 }
 0x287   :  { %750 = vpow2.f32 %v651_v56  ;;  %v705_v57 = vpop.f32.mrb[6].mxu1 }
 0x288   :  { %v741_v58 = vpop.eup %740  ;;  %v654_v59 = vmul.f32 -1.442695, %v705_v57  ;;  %v361_v60 = vpop.f32.mrb[7].mxu1 }
 0x289   :  { %v743_v61 = vpop.eup %742  ;;  %v395_v62 = vadd.f32 1.0, %v741_v58  ;;  %v653_v63 = vmul.f32 -1.442695, %v361_v60 }
 0x28a   :  { %v394_v3 = vadd.f32 1.0, %v743_v61  ;;  %752 = vpow2.f32 %v654_v59 }
 0x28b   :  { %754 = vrcp.f32 %v395_v62 }
 0x28c   :  { %v745_v7 = vpop.eup %744  ;;  %756 = vrcp.f32 %v394_v3 }
 0x28d   :  { %v747_v48 = vpop.eup %746  ;;  %v397_v10 = vadd.f32 1.0, %v745_v7  ;;  %758 = vpow2.f32 %v653_v63 }
 0x28e   :  { %v396_v11 = vadd.f32 1.0, %v747_v48 }
 0x28f   :  { %760 = vrcp.f32 %v397_v10 }
 0x290   :  { %v749_v16 = vpop.eup %748  ;;  %762 = vrcp.f32 %v396_v11 }
 0x291   :  { %v751_v17 = vpop.eup %750  ;;  %v399_v22 = vadd.f32 1.0, %v749_v16 }
 0x292   :  { %v398_v23 = vadd.f32 1.0, %v751_v17 }
 0x293   :  { %764 = vrcp.f32 %v399_v22 }
 0x294   :  { %v753_v28 = vpop.eup %752  ;;  %766 = vrcp.f32 %v398_v23 }
 0x295   :  { %v755_v29 = vpop.eup %754  ;;  %v401_v40 = vadd.f32 1.0, %v753_v28 }
 0x296   :  { %v757_v41 = vpop.eup %756  ;;  %420 = vst.msk [vmem:[#allocation3 + $0x8] sm:$0xff] %vm418_vm6, %v755_v29 }
 0x297   :  { %v759_v46 = vpop.eup %758  ;;  %419 = vst.msk [vmem:[#allocation3] sm:$0xff] %vm418_vm6, %v757_v41  ;;  %768 = vrcp.f32 %v401_v40 }
 0x298   :  { %v400_v47 = vadd.f32 1.0, %v759_v46 }
 0x299   :  { %v761_v49 = vpop.eup %760 }
 0x29a   :  { %v763_v50 = vpop.eup %762  ;;  %422 = vst.msk [vmem:[#allocation3 + $0x18] sm:$0xff] %vm418_vm6, %v761_v49  ;;  %770 = vrcp.f32 %v400_v47 }
 0x29b   :  { %421 = vst.msk [vmem:[#allocation3 + $0x10] sm:$0xff] %vm418_vm6, %v763_v50 }
 0x29d   :  { %v765_v51 = vpop.eup %764  ;;  %v524_v52 = vld [vmem:[#allocation3 + $0x8] sm:$0xff] }
 0x29e   :  { %v767_v53 = vpop.eup %766  ;;  %424 = vst.msk [vmem:[#allocation3 + $0x28] sm:$0xff] %vm418_vm6, %v765_v51  ;;  %554 = vperm.xlu0 %728, %v524_v52   ;;  %458 = vperm.xlu1 %727, %v524_v52   ;;  %v523_v55 = vld [vmem:[#allocation3] sm:$0xff] }
 0x29f   :  { %423 = vst.msk [vmem:[#allocation3 + $0x20] sm:$0xff] %vm418_vm6, %v767_v53 }
 0x2a1   :  { %v769_v54 = vpop.eup %768  ;;  %v430_v57 = vld [vmem:[#allocation3 + $0x18] sm:$0xff] }
 0x2a2   :  { %729 = vset.pattern.permute.xlu0 %v827_v35  ;;  %730 = vset.pattern.permute.xlu1 %v826_v34  ;;  %426 = vst.msk [vmem:[#allocation3 + $0x38] sm:$0xff] %vm418_vm6, %v769_v54  ;;  %v429_v60 = vld [vmem:[#allocation3 + $0x10] sm:$0xff] }
 0x2a3   :  { %549 = vperm.xlu1 %730, %v523_v55   ;;  %453 = vperm.xlu0 %729, %v523_v55  }
 0x2a4   :  { %v771_v56 = vpop.eup %770 }
 0x2a5   :  { %425 = vst.msk [vmem:[#allocation3 + $0x30] sm:$0xff] %vm418_vm6, %v771_v56  ;;  %v432_v61 = vld [vmem:[#allocation3 + $0x28] sm:$0xff] }
 0x2a6   :  { %v527_v58 = vld [vmem:[#allocation3 + $0x20] sm:$0xff] }
 0x2a7   :  { %731 = vset.pattern.permute.xlu1 %v827_v35  ;;  %738 = vset.pattern.permute.xlu0 %v826_v34 }
 0x2a8   :  { %468 = vperm.xlu1 %731, %v430_v57   ;;  %569 = vperm.xlu0 %738, %v527_v58  }
 0x2a9   :  { %v434_v62 = vld [vmem:[#allocation3 + $0x38] sm:$0xff] }
 0x2ac   :  { %732 = vset.pattern.permute.xlu1 %v826_v34  ;;  %v529_v59 = vld [vmem:[#allocation3 + $0x30] sm:$0xff] }
 0x2ad   :  { %564 = vperm.xlu1 %732, %v430_v57   ;;  %579 = vperm.xlu0 %738, %v529_v59  }
 0x2b1   :  { %733 = vset.pattern.permute.xlu1 %v827_v35 }
 0x2b2   :  { %463 = vperm.xlu1 %733, %v429_v60  }
 0x2b6   :  { %734 = vset.pattern.permute.xlu1 %v826_v34 }
 0x2b7   :  { %559 = vperm.xlu1 %734, %v429_v60  }
 0x2bb   :  { %735 = vset.pattern.permute.xlu1 %v827_v35 }
 0x2bc   :  { %478 = vperm.xlu1 %735, %v432_v61  }
 0x2c0   :  { %736 = vset.pattern.permute.xlu1 %v826_v34 }
 0x2c1   :  { %574 = vperm.xlu1 %736, %v432_v61  }
 0x2c5   :  { %737 = vset.pattern.permute.xlu1 %v827_v35 }
 0x2c6   :  { %473 = vperm.xlu1 %737, %v527_v58  }
 0x2ca   :  { %488 = vperm.xlu1 %737, %v434_v62  }
 0x2ce   :  { %483 = vperm.xlu1 %737, %v529_v59  }
 0x2d2   :  { %739 = vset.pattern.permute.xlu1 %v826_v34 }
 0x2d3   :  { %584 = vperm.xlu1 %739, %v434_v62  }
 0x31d   :  { %v555_v63 = vpop.permute.xlu0 %554  ;;  %v459_v3 = vpop.permute.xlu1 %458 }
 0x31e   :  { %v589_v7 = vmul.f32 %v555_v63, %v874_v5  ;;  %v590_v48 = vmul.f32 %v555_v63, %v876_v6  ;;  %v493_v10 = vmul.f32 %v459_v3, %v880_v8  ;;  %v494_v11 = vmul.f32 %v459_v3, %v882_v9 }
 0x320   :  { %606 = vst [vmem:[#allocation7 + $0x90] sm:$0xff] %v589_v7  ;;  %607 = vst [vmem:[#allocation7 + $0x98] sm:$0xff] %v590_v48 }
 0x321   :  { %509 = vst [vmem:[#allocation7 + $0x10] sm:$0xff] %v493_v10  ;;  %510 = vst [vmem:[#allocation7 + $0x18] sm:$0xff] %v494_v11 }
 0x322   :  { %v550_v35 = vpop.permute.xlu1 %549  ;;  %v454_v16 = vpop.permute.xlu0 %453 }
 0x323   :  { %v587_v17 = vmul.f32 %v550_v35, %v864_v0  ;;  %v588_v34 = vmul.f32 %v550_v35, %v866_v1  ;;  %v491_v22 = vmul.f32 %v454_v16, %v868_v2  ;;  %v492_v5 = vmul.f32 %v454_v16, %v872_v4 }
 0x325   :  { %604 = vst [vmem:[#allocation7 + $0x80] sm:$0xff] %v587_v17  ;;  %605 = vst [vmem:[#allocation7 + $0x88] sm:$0xff] %v588_v34 }
 0x326   :  { %507 = vst [vmem:[#allocation7] sm:$0xff] %v491_v22  ;;  %508 = vst [vmem:[#allocation7 + $0x8] sm:$0xff] %v492_v5 }
 0x327   :  { %v469_v6 = vpop.permute.xlu1 %468  ;;  %v570_v8 = vpop.permute.xlu0 %569 }
 0x328   :  { %v497_v9 = vmul.f32 %v469_v6, %v888_v12  ;;  %v498_v23 = vmul.f32 %v469_v6, %v890_v13  ;;  %v595_v28 = vmul.f32 %v570_v8, %v928_v32  ;;  %v596_v0 = vmul.f32 %v570_v8, %v930_v33 }
 0x32a   :  { %513 = vst [vmem:[#allocation7 + $0x30] sm:$0xff] %v497_v9  ;;  %514 = vst [vmem:[#allocation7 + $0x38] sm:$0xff] %v498_v23 }
 0x32b   :  { %612 = vst [vmem:[#allocation7 + $0xc0] sm:$0xff] %v595_v28  ;;  %613 = vst [vmem:[#allocation7 + $0xc8] sm:$0xff] %v596_v0 }
 0x32c   :  { %v565_v1 = vpop.permute.xlu1 %564  ;;  %v580_v2 = vpop.permute.xlu0 %579 }
 0x32d   :  { %v593_v4 = vmul.f32 %v565_v1, %v900_v18  ;;  %v594_v29 = vmul.f32 %v565_v1, %v902_v19  ;;  %v599_v40 = vmul.f32 %v580_v2, %v952_v44  ;;  %v600_v12 = vmul.f32 %v580_v2, %v954_v45 }
 0x32f   :  { %610 = vst [vmem:[#allocation7 + $0xb0] sm:$0xff] %v593_v4  ;;  %611 = vst [vmem:[#allocation7 + $0xb8] sm:$0xff] %v594_v29 }
 0x330   :  { %616 = vst [vmem:[#allocation7 + $0xe0] sm:$0xff] %v599_v40  ;;  %617 = vst [vmem:[#allocation7 + $0xe8] sm:$0xff] %v600_v12 }
 0x331   :  { %v464_v13 = vpop.permute.xlu1 %463 }
 0x332   :  { %v495_v32 = vmul.f32 %v464_v13, %v892_v14  ;;  %v496_v33 = vmul.f32 %v464_v13, %v894_v15 }
 0x334   :  { %511 = vst [vmem:[#allocation7 + $0x20] sm:$0xff] %v495_v32  ;;  %512 = vst [vmem:[#allocation7 + $0x28] sm:$0xff] %v496_v33 }
 0x336   :  { %v560_v41 = vpop.permute.xlu1 %559 }
 0x337   :  { %v591_v18 = vmul.f32 %v560_v41, %v904_v20  ;;  %v592_v19 = vmul.f32 %v560_v41, %v906_v21 }
 0x339   :  { %608 = vst [vmem:[#allocation7 + $0xa0] sm:$0xff] %v591_v18  ;;  %609 = vst [vmem:[#allocation7 + $0xa8] sm:$0xff] %v592_v19 }
 0x33b   :  { %v479_v44 = vpop.permute.xlu1 %478 }
 0x33c   :  { %v501_v45 = vmul.f32 %v479_v44, %v912_v24  ;;  %v502_v46 = vmul.f32 %v479_v44, %v914_v25 }
 0x33e   :  { %517 = vst [vmem:[#allocation7 + $0x50] sm:$0xff] %v501_v45  ;;  %518 = vst [vmem:[#allocation7 + $0x58] sm:$0xff] %v502_v46 }
 0x340   :  { %v575_v47 = vpop.permute.xlu1 %574 }
 0x341   :  { %v597_v14 = vmul.f32 %v575_v47, %v924_v30  ;;  %v598_v15 = vmul.f32 %v575_v47, %v926_v31 }
 0x343   :  { %614 = vst [vmem:[#allocation7 + $0xd0] sm:$0xff] %v597_v14  ;;  %615 = vst [vmem:[#allocation7 + $0xd8] sm:$0xff] %v598_v15 }
 0x345   :  { %v474_v49 = vpop.permute.xlu1 %473 }
 0x346   :  { %v499_v20 = vmul.f32 %v474_v49, %v916_v26  ;;  %v500_v21 = vmul.f32 %v474_v49, %v918_v27 }
 0x348   :  { %515 = vst [vmem:[#allocation7 + $0x40] sm:$0xff] %v499_v20  ;;  %516 = vst [vmem:[#allocation7 + $0x48] sm:$0xff] %v500_v21 }
 0x349   :  { %v489_v50 = vpop.permute.xlu1 %488 }
 0x34a   :  { %v505_v24 = vmul.f32 %v489_v50, %v936_v36  ;;  %v506_v25 = vmul.f32 %v489_v50, %v938_v37 }
 0x34c   :  { %521 = vst [vmem:[#allocation7 + $0x70] sm:$0xff] %v505_v24  ;;  %522 = vst [vmem:[#allocation7 + $0x78] sm:$0xff] %v506_v25 }
 0x34d   :  { %v484_v51 = vpop.permute.xlu1 %483 }
 0x34e   :  { %v503_v30 = vmul.f32 %v484_v51, %v940_v38  ;;  %v504_v31 = vmul.f32 %v484_v51, %v942_v39 }
 0x350   :  { %519 = vst [vmem:[#allocation7 + $0x60] sm:$0xff] %v503_v30  ;;  %520 = vst [vmem:[#allocation7 + $0x68] sm:$0xff] %v504_v31 }
 0x352   :  { %v585_v26 = vpop.permute.xlu1 %584 }
 0x353   :  { %v601_v27 = vmul.f32 %v585_v26, %v948_v42  ;;  %v602_v52 = vmul.f32 %v585_v26, %v950_v43 }
 0x355   :  { %618 = vst [vmem:[#allocation7 + $0xf0] sm:$0xff] %v601_v27  ;;  %619 = vst [vmem:[#allocation7 + $0xf8] sm:$0xff] %v602_v52 }
 0x356   :  { %805 = shalt.err (!%p802_p12)
}
 0x357   :  { %s806_s19 = scalar_lea.hbm %s1086_s3, 4096 }
 0x358   :  { %p807_p13 = scmp.ne.s32.totalorder %s1086_s3, %s806_s19  ;;  %p810_p0 = scmp.lt.u32.totalorder %s806_s19, %s1086_s3 }
 0x35a   :  { %p812_p1 = pnand %p810_p0, %p807_p13 }
 0x35c   :  { %815 = shalt.err (!%p812_p1)
}
 0x35d   :  { %631 = dma.vmem_to_hbm [thread:$0]  %s626_s15, 4096, %s1086_s3, [#allocation6], %s821_s22, %s821_s22, %s822_s23  }
 0x35e   :  { %818 = dma.done.wait [#allocation6], 4096  }
 0x35f   :  { %819 = vsyncadd [#allocation6], 4294963200 }
 0x360   :  { %635 = vsyncpa [#allocation5], 1 }
 0x361   :  { %636 = vsyncpa [#allocation6], 1 }

</bundles_post_ra>
